<compile_context>
chip_gen: v7x
topology: tpu7x:2x2x1
jax: 0.10.0
libtpu: 0.0.40
codegen_flags: <defaults>
</compile_context>

<pallas_src>
import functools
import math

import jax
import jax.numpy as jnp
from jax.experimental import pallas as pl
from jax.experimental.pallas import tpu as pltpu

BN_EPS = 1e-5
BN_SCALE = 1.0 / math.sqrt(1.0 + BN_EPS)  # eval-mode BN with default stats
LANE = 128


# ---------------------------------------------------------------------------
# Pallas kernels: single-shot (whole-K) bf16 matmul with fused bias /
# activation / optional residual add.  f32 accumulation on the MXU, bf16 store.
# ---------------------------------------------------------------------------
def _matmul_kernel(a_ref, b_ref, bias_ref, o_ref, *, act):
    acc = jnp.dot(a_ref[...], b_ref[...], preferred_element_type=jnp.float32)
    r = acc + bias_ref[...]
    if act == "relu":
        r = jnp.maximum(r, 0.0)
    elif act == "sigmoid":
        r = jax.nn.sigmoid(r)
    o_ref[...] = r.astype(o_ref.dtype)


def _matmul_add_kernel(a_ref, b_ref, bias_ref, add_ref, o_ref, *, act):
    acc = jnp.dot(a_ref[...], b_ref[...], preferred_element_type=jnp.float32)
    r = acc + bias_ref[...] + add_ref[...].astype(jnp.float32)
    if act == "relu":
        r = jnp.maximum(r, 0.0)
    elif act == "sigmoid":
        r = jax.nn.sigmoid(r)
    o_ref[...] = r.astype(o_ref.dtype)


@functools.partial(jax.jit, static_argnames=("act", "tm", "tn"))
def _padded_matmul(a, b, bias, *, act, tm, tn):
    Mp, Kp = a.shape
    Np = b.shape[1]
    return pl.pallas_call(
        functools.partial(_matmul_kernel, act=act),
        out_shape=jax.ShapeDtypeStruct((Mp, Np), jnp.bfloat16),
        grid_spec=pltpu.PrefetchScalarGridSpec(
            num_scalar_prefetch=0,
            grid=(Mp // tm, Np // tn),
            in_specs=[
                pl.BlockSpec((tm, Kp), lambda i, j: (i, 0)),
                pl.BlockSpec((Kp, tn), lambda i, j: (0, j)),
                pl.BlockSpec((1, tn), lambda i, j: (0, j)),
            ],
            out_specs=pl.BlockSpec((tm, tn), lambda i, j: (i, j)),
        ),
        compiler_params=pltpu.CompilerParams(
            dimension_semantics=("parallel", "parallel")),
    )(a, b, bias)


@functools.partial(jax.jit, static_argnames=("act", "tm", "tn"))
def _padded_matmul_add(a, b, bias, add, *, act, tm, tn):
    Mp, Kp = a.shape
    Np = b.shape[1]
    return pl.pallas_call(
        functools.partial(_matmul_add_kernel, act=act),
        out_shape=jax.ShapeDtypeStruct((Mp, Np), jnp.bfloat16),
        grid_spec=pltpu.PrefetchScalarGridSpec(
            num_scalar_prefetch=0,
            grid=(Mp // tm, Np // tn),
            in_specs=[
                pl.BlockSpec((tm, Kp), lambda i, j: (i, 0)),
                pl.BlockSpec((Kp, tn), lambda i, j: (0, j)),
                pl.BlockSpec((1, tn), lambda i, j: (0, j)),
                pl.BlockSpec((tm, tn), lambda i, j: (i, j)),
            ],
            out_specs=pl.BlockSpec((tm, tn), lambda i, j: (i, j)),
        ),
        compiler_params=pltpu.CompilerParams(
            dimension_semantics=("parallel", "parallel")),
    )(a, b, bias, add)


# ---------------------------------------------------------------------------
# Matmul wrapper (tiling / routing)
# ---------------------------------------------------------------------------
def _round_up(x, m):
    return (x + m - 1) // m * m


def _choose_tiles(Mp, Np):
    """Whole-N tiles up to 256 (v6e/v7x MXU width); guarantee >=2 parallel
    grid blocks so both v7x TensorCores get work (harmless on v5e/v6e)."""
    tn = Np if Np <= 256 else 256
    tm = min(Mp, 256)
    if (Mp // tm) * (Np // tn) < 2 and Mp >= 16:
        tm = max(Mp // 2, 8)          # Mp is a multiple of 128 -> tm % 8 == 0
    return tm, tn


def _act(x, act):
    if act == "relu":
        return jnp.maximum(x, 0.0)
    if act == "sigmoid":
        return jax.nn.sigmoid(x)
    return x


def dense(a, p, act="none", add=None):
    """(M, K) @ weight + bias (+ optional residual) with fused activation.

    Real workloads go through the whole-K Pallas MXU kernel (bf16 in/out,
    f32 accumulation).  Degenerate matmuls -- tiny M (SE on pooled features)
    or tiny N (the 16-channel CE branch convs, which would waste 8x on
    N padding) -- go to plain jnp.dot.
    """
    M, K = a.shape
    N = p["cout"]
    if M < 64 or N < 64 or "wp" not in p:
        out = a.astype(jnp.float32) @ p["w2d"] + p["b"]
        if add is not None:
            out = out + add.astype(jnp.float32)
        return _act(out, act)

    Kp, Np = p["wp"].shape
    Mp = _round_up(M, LANE)
    a16 = a.astype(jnp.bfloat16)
    if (M, K) != (Mp, Kp):
        a16 = jnp.pad(a16, ((0, Mp - M), (0, Kp - K)))
    tm, tn = _choose_tiles(Mp, Np)

    if add is not None:
        add16 = add.astype(jnp.bfloat16)
        if (M, N) != (Mp, Np):
            add16 = jnp.pad(add16, ((0, Mp - M), (0, Np - N)))
        out = _padded_matmul_add(a16, p["wp"], p["bp"], add16,
                                 act=act, tm=tm, tn=tn)
    else:
        out = _padded_matmul(a16, p["wp"], p["bp"], act=act, tm=tm, tn=tn)
    if (Mp, Np) != (M, N):
        out = out[:M, :N]
    return out


# ---------------------------------------------------------------------------
# Convolutions built on the Pallas matmul
# ---------------------------------------------------------------------------
def _im2col(x, kh, kw, stride, padding, dilation):
    """Patch extraction in bf16 (half the materialised bandwidth of f32)."""
    B, H, W, C = x.shape
    xp = jnp.pad(x.astype(jnp.bfloat16),
                 ((0, 0), (padding, padding), (padding, padding), (0, 0)))
    Hp, Wp = H + 2 * padding, W + 2 * padding
    eff_h = (kh - 1) * dilation + 1
    eff_w = (kw - 1) * dilation + 1
    Ho = (Hp - eff_h) // stride + 1
    Wo = (Wp - eff_w) // stride + 1
    cols = []
    for i in range(kh):
        for j in range(kw):
            di, dj = i * dilation, j * dilation
            cols.append(xp[:, di:di + stride * (Ho - 1) + 1:stride,
                           dj:dj + stride * (Wo - 1) + 1:stride, :])
    col = jnp.concatenate(cols, axis=-1).reshape(B * Ho * Wo, kh * kw * C)
    return col, Ho, Wo


def conv2d(x, p, stride=1, padding=0, dilation=1, act="none", add=None):
    B, H, W, C = x.shape
    kh, kw = p["kh"], p["kw"]
    if kh == 1 and kw == 1 and stride == 1 and padding == 0:
        col = x.astype(jnp.bfloat16).reshape(B * H * W, C)   # no im2col copy
        Ho, Wo = H, W
    else:
        # TODO(synk): patch extraction still materialises KH*KW shifted copies
        # in XLA; fully in-kernel im2col (tap loop over pl.ds offsets) is not
        # implemented here.
        col, Ho, Wo = _im2col(x, kh, kw, stride, padding, dilation)
    add2d = None if add is None else add.reshape(-1, add.shape[-1])
    out = dense(col, p, act=act, add=add2d)
    return out.reshape(B, Ho, Wo, p["cout"])


def run_deconv(x, p):
    """ConvTranspose2d(k=3, stride=2, pad=1, out_pad=1) + folded BN + ReLU,
    implemented as a single 4-phase (sub-pixel) dense matmul -- no zero-dilated
    input, no wasted FLOPs on zero taps."""
    B, H, W, C = x.shape
    xs_w = jnp.pad(x, ((0, 0), (0, 0), (0, 1), (0, 0)))[:, :, 1:, :]
    xs_h = jnp.pad(x, ((0, 0), (0, 1), (0, 0), (0, 0)))[:, 1:, :, :]
    xs_hw = jnp.pad(x, ((0, 0), (0, 1), (0, 1), (0, 0)))[:, 1:, 1:, :]
    a = jnp.concatenate([x, xs_w, xs_h, xs_hw], axis=-1).reshape(B * H * W, 4 * C)
    out = dense(a, p, act="relu")                             # (B*H*W, 4*Cout)
    co = p["out_ch"]
    out = out.reshape(B, H, W, 2, 2, co)                      # (.., ph, pw, C)
    out = out.transpose(0, 1, 3, 2, 4, 5).reshape(B, 2 * H, 2 * W, co)
    return out


# ---------------------------------------------------------------------------
# Parameter construction (deterministic)
# ---------------------------------------------------------------------------
class KeyGen:
    def __init__(self, seed):
        self.key = jax.random.PRNGKey(seed)

    def __call__(self):
        self.key, k = jax.random.split(self.key)
        return k


KG = KeyGen(0)


def _pad_matmul_weights(w2d, b):
    K, N = w2d.shape
    Kp, Np = _round_up(K, LANE), _round_up(N, LANE)
    wp = jnp.zeros((Kp, Np), jnp.bfloat16).at[:K, :N].set(w2d.astype(jnp.bfloat16))
    bp = jnp.zeros((1, Np), jnp.float32).at[0, :N].set(b)
    return wp, bp


def conv_p(kh, kw, cin, cout, bn=True, pad=True):
    w = jax.random.normal(KG(), (kh, kw, cin, cout), jnp.float32) / math.sqrt(kh * kw * cin)
    b = jnp.zeros((cout,), jnp.float32)
    if bn:  # fold eval-mode BatchNorm (gamma=1, beta=0, mean=0, var=1)
        w = w * BN_SCALE
        b = b * BN_SCALE
    p = {"kh": kh, "kw": kw, "cin": cin, "cout": cout,
         "w2d": w.reshape(kh * kw * cin, cout), "b": b}
    if pad and cout >= 64:
        p["wp"], p["bp"] = _pad_matmul_weights(p["w2d"], b)
    return p


def deconv_p(cin, cout):
    """ConvTranspose2d(3, stride=2, pad=1, out_pad=1) + folded BN, expressed as
    a 4-phase matmul weight of shape (4*Cin, 4*Cout)."""
    # TODO(synk): synthetic weights; PyTorch's (Cin,Cout,KH,KW) layout is not
    # reproduced bit-exactly (random init absorbs it), phase mapping matches
    # the conv-transpose tap equations for stride 2 / pad 1 / out_pad 1.
    w = jax.random.normal(KG(), (3, 3, cin, cout), jnp.float32) / math.sqrt(9 * cin)
    w = w * BN_SCALE
    b = jnp.zeros((cout,), jnp.float32)
    Z = jnp.zeros((cin, cout), jnp.float32)

    def blk(kh, kw):
        return w[kh, kw]

    # A rows: [x | x shifted +1 in W | +1 in H | +1 in H&W]
    col_ee = jnp.concatenate([blk(1, 1), Z, Z, Z], axis=0)
    col_eo = jnp.concatenate([blk(1, 2), blk(1, 0), Z, Z], axis=0)
    col_oe = jnp.concatenate([blk(2, 1), Z, blk(0, 1), Z], axis=0)
    col_oo = jnp.concatenate([blk(2, 2), blk(2, 0), blk(0, 2), blk(0, 0)], axis=0)
    w2d = jnp.concatenate([col_ee, col_eo, col_oe, col_oo], axis=1)  # (4Cin,4Cout)
    b4 = jnp.tile(b, 4)
    p = {"cout": 4 * cout, "out_ch": cout, "w2d": w2d, "b": b4}
    p["wp"], p["bp"] = _pad_matmul_weights(w2d, b4)
    return p


# TODO(synk): SEWeightModule is not defined in the provided source; the
# standard EPSANet definition (global avgpool -> 1x1 conv C->C/16 -> ReLU ->
# 1x1 conv -> sigmoid) is assumed here.
def make_se(channels, reduction=16):
    mid = max(channels // reduction, 1)
    return {"fc1": conv_p(1, 1, channels, mid, bn=False, pad=False),
            "fc2": conv_p(1, 1, mid, channels, bn=False, pad=False)}


def make_ce(in_ch):
    cs = in_ch // 4
    # The four 1x1 channel-reduction convs are fused into one matmul
    # (weights concatenated along N); the forward slices the result.
    reduce = conv_p(1, 1, in_ch, 4 * cs)
    return {
        "cs": cs,
        "reduce": reduce,
        # self.p1 / self.p1_dc exist in the PyTorch module but are unused in forward()
        "p2": conv_p(3, 3, cs, cs),
        "p2dc": conv_p(3, 3, cs, cs),
        "p3": conv_p(5, 5, cs, cs),
        "p3dc": conv_p(3, 3, cs, cs),
        "p4": conv_p(7, 7, cs, cs),
        "p4dc": conv_p(3, 3, cs, cs),
        "se": make_se(cs),
        "fusion": conv_p(1, 1, in_ch, in_ch),
    }


def make_params(in_ch1, out_ch, in_ch2):
    cat_ch = out_ch + 2 * in_ch2
    return {
        "deconv": deconv_p(in_ch1, out_ch),
        "ce": make_ce(in_ch2),
        "se": make_se(cat_ch),
        "conv": {"c1": conv_p(3, 3, cat_ch, out_ch),
                 "c2": conv_p(3, 3, out_ch, out_ch),
                 "idn": conv_p(1, 1, cat_ch, out_ch)},
    }


# ---------------------------------------------------------------------------
# Sub-module forward functions
# ---------------------------------------------------------------------------
def run_se(x, p):
    """Degenerate matmuls (M = batch) -> plain jnp (XLA), not Pallas."""
    pooled = jnp.mean(x.astype(jnp.float32), axis=(1, 2))      # (B, C)
    h = jnp.maximum(pooled @ p["fc1"]["w2d"] + p["fc1"]["b"], 0.0)
    s = jax.nn.sigmoid(h @ p["fc2"]["w2d"] + p["fc2"]["b"])
    return s[:, None, None, :]                                 # (B,1,1,C)


def run_ce(x, p):
    cs = p["cs"]
    # Single fused matmul for all four channel reductions (relu then slice ==
    # per-branch conv+relu since the branches are independent columns).
    red = conv2d(x, p["reduce"], act="relu")                   # (B,H,W,4*cs)
    p1_in = red[..., 0 * cs:1 * cs]
    p2_in = red[..., 1 * cs:2 * cs] + p1_in
    p2 = conv2d(p2_in, p["p2"], padding=1, act="relu")
    p2_dc = conv2d(p2, p["p2dc"], padding=2, dilation=2, act="relu")
    p3_in = red[..., 2 * cs:3 * cs] + p2_dc
    p3 = conv2d(p3_in, p["p3"], padding=2, act="relu")
    p3_dc = conv2d(p3, p["p3dc"], padding=4, dilation=4, act="relu")
    p4_in = red[..., 3 * cs:4 * cs] + p3_dc
    p4 = conv2d(p4_in, p["p4"], padding=3, act="relu")
    p4_dc = conv2d(p4, p["p4dc"], padding=8, dilation=8, act="relu")
    se = p["se"]
    feats = [p1_in, p2_dc, p3_dc, p4_dc]
    weighted = [run_se(f, se) * f.astype(jnp.float32) for f in feats]
    cat = jnp.concatenate(weighted, axis=-1)
    return conv2d(cat, p["fusion"], act="relu")


def run_double_conv(x, p):
    y = conv2d(x, p["c1"], padding=1, act="relu")
    idn = conv2d(x, p["idn"])                       # 1x1 identity branch
    # Residual add + ReLU fused into the c2 matmul epilogue (one kernel,
    # no separate add+ReLU pass over HBM).
    return conv2d(y, p["c2"], padding=1, act="relu", add=idn)


def decoder1_forward(x1_nchw, x2_nchw, x3_nchw, params):
    x1 = jnp.transpose(x1_nchw, (0, 2, 3, 1))
    x2 = jnp.transpose(x2_nchw, (0, 2, 3, 1))
    x3 = jnp.transpose(x3_nchw, (0, 2, 3, 1))

    x1 = run_deconv(x1, params["deconv"])          # deconv + BN + ReLU (fused)
    c2 = run_ce(x2, params["ce"])                  # Context_Exploration_Block
    c = jnp.concatenate([x1, c2, x3.astype(jnp.bfloat16)], axis=-1)
    w = run_se(c, params["se"]) * c.astype(jnp.float32)   # SEWeightModule gate
    fuse = run_double_conv(w, params["conv"])      # DoubleConv (add+ReLU fused)
    return jnp.transpose(fuse, (0, 3, 1, 2)).astype(jnp.float32)  # NHWC -> NCHW


# ---------------------------------------------------------------------------
if __name__ == "__main__":
    key = jax.random.PRNGKey(0)
    k1, k2, k3 = jax.random.split(key, 3)

    B, in_ch1, out_ch, in_ch2 = 2, 64, 64, 64
    H = W = 8                                   # x1 spatial; x2/x3 are 2x
    x1 = jax.random.normal(k1, (B, in_ch1, H, W), jnp.float32)
    x2 = jax.random.normal(k2, (B, in_ch2, 2 * H, 2 * W), jnp.float32)
    x3 = jax.random.normal(k3, (B, in_ch2, 2 * H, 2 * W), jnp.float32)

    params = make_params(in_ch1, out_ch, in_ch2)
    fwd = jax.jit(lambda a, b, c: decoder1_forward(a, b, c, params))

    out = jax.block_until_ready(fwd(x1, x2, x3))
    assert out.shape == (B, out_ch, 2 * H, 2 * W), out.shape
    assert bool(jnp.all(jnp.isfinite(out)))
    print("KERNEL_OK")
</pallas_src>

<mosaic_0001>
module attributes {stable_mosaic.version = 11 : i64} {
  func.func @_matmul_kernel(%arg0: i32, %arg1: i32, %arg2: memref<64x256xbf16, #tpu.memory_space<vmem>>, %arg3: memref<256x256xbf16, #tpu.memory_space<vmem>>, %arg4: memref<1x256xf32, #tpu.memory_space<vmem>>, %arg5: memref<64x256xbf16, #tpu.memory_space<vmem>>) attributes {dimension_semantics = [#tpu.dimension_semantics<parallel>, #tpu.dimension_semantics<parallel>], iteration_bounds = array<i64: 2, 1>, scalar_prefetch = 0 : i64, scratch_operands = 0 : i64, tpu.core_type = #tpu.core_type<tc>, window_params = [{transform_indices = @transform_0, window_bounds = array<i64: 64, 256>}, {transform_indices = @transform_1, window_bounds = array<i64: 256, 256>}, {transform_indices = @transform_2, window_bounds = array<i64: 1, 256>}, {transform_indices = @transform_3, window_bounds = array<i64: 64, 256>}]} {
    %c0 = arith.constant 0 : index
    %c0_0 = arith.constant 0 : index
    %0 = vector.load %arg2[%c0, %c0_0] : memref<64x256xbf16, #tpu.memory_space<vmem>>, vector<64x256xbf16>
    %c0_1 = arith.constant 0 : index
    %c0_2 = arith.constant 0 : index
    %1 = vector.load %arg3[%c0_1, %c0_2] : memref<256x256xbf16, #tpu.memory_space<vmem>>, vector<256x256xbf16>
    %cst = arith.constant dense<0.000000e+00> : vector<64x256xf32>
    %2 = tpu.matmul %0, %1, %cst {dimension_numbers = #tpu.dot_dimension_numbers<[1], [0], [0], [1], [0, 0, 1, 1], [], []>} : vector<64x256xbf16>, vector<256x256xbf16>, vector<64x256xf32> -> vector<64x256xf32>
    %c0_3 = arith.constant 0 : index
    %c0_4 = arith.constant 0 : index
    %3 = vector.load %arg4[%c0_3, %c0_4] : memref<1x256xf32, #tpu.memory_space<vmem>>, vector<1x256xf32>
    %4 = vector.broadcast %3 : vector<1x256xf32> to vector<64x256xf32>
    %5 = arith.addf %2, %4 : vector<64x256xf32>
    %cst_5 = arith.constant 0.000000e+00 : f32
    %6 = vector.broadcast %cst_5 : f32 to vector<64x256xf32>
    %7 = arith.maximumf %5, %6 : vector<64x256xf32>
    %8 = arith.truncf %7 : vector<64x256xf32> to vector<64x256xbf16>
    %c0_6 = arith.constant 0 : index
    %c0_7 = arith.constant 0 : index
    %9 = vector.load %arg5[%c0_6, %c0_7] : memref<64x256xbf16, #tpu.memory_space<vmem>>, vector<64x256xbf16>
    tpu.vector_store %arg5[%c0_6, %c0_7], %8 {strides = array<i32>} : memref<64x256xbf16, #tpu.memory_space<vmem>>, vector<64x256xbf16>,
    return
  }
  func.func @transform_0(%arg0: i32, %arg1: i32) -> (i32, i32) {
    %c0_i32 = arith.constant 0 : i32
    %c0_i32_0 = arith.constant 0 : i32
    return %arg0, %c0_i32 : i32, i32
  }
  func.func @transform_1(%arg0: i32, %arg1: i32) -> (i32, i32) {
    %c0_i32 = arith.constant 0 : i32
    %c0_i32_0 = arith.constant 0 : i32
    return %c0_i32, %arg1 : i32, i32
  }
  func.func @transform_2(%arg0: i32, %arg1: i32) -> (i32, i32) {
    %c0_i32 = arith.constant 0 : i32
    %c0_i32_0 = arith.constant 0 : i32
    return %c0_i32, %arg1 : i32, i32
  }
  func.func @transform_3(%arg0: i32, %arg1: i32) -> (i32, i32) {
    %c0_i32 = arith.constant 0 : i32
    return %arg0, %arg1 : i32, i32
  }
}

</mosaic_0001>

<bundles_post_ra>
// kernel: _padded_matmul.1
= control target key start
LH: loop header
LB: loop body
LE: loop exit
PB: predicated region body
PF: predicated region fallthrough
CT: control target
= control target key end

     0   :  { %8 = vsyncpa [#allocation3], 0  ;;  %s1447_s0 = inlined_call_operand.hbm [shape: bf16[128,256], index: 0, kind: input, shape index: {}]   ;;  %s1448_s1 = inlined_call_operand.hbm [shape: bf16[256,256], index: 1, kind: input, shape index: {}]   ;;  %s1449_s2 = inlined_call_operand.vmem [shape: f32[1,256], index: 2, kind: input, shape index: {}]   ;;  %s1450_s3 = inlined_call_operand.hbm [shape: bf16[128,256], index: 3, kind: output, shape index: {}]  }
   0x1   :  { %10 = vsyncpa [#allocation3 + $0x1], 0 }
   0x2   :  { %11 = vsyncpa [#allocation6], 0 }
   0x3   :  { %12 = vsyncpa [#allocation4], 0 }
   0x4   :  { %14 = vsyncpa [#allocation4 + $0x1], 0  ;;  %s1194_s12 = smov 0   ;;  %s1196_s13 = smov 0  }
   0x5   :  { %s1198_s14 = smov 0   ;;  %s1200_s15 = smov 0  }
   0x6   :  { %s1202_s16 = smov 0   ;;  %s1204_s17 = smov 0  }
   0x7 LB: > { %s772_s18 = sadd.s32 4294967295, %s1165_s17   ;;  %s773_s19 = sadd.s32 4294967294, %s1165_s17   ;;  %s1165_s17 = sphi %s1204_s17, %s20_s17   ;;  %s1161_s16 = sphi %s1202_s16, %s1474_s16   ;;  %s1157_s15 = sphi %s1200_s15, %s1473_s15   ;;  %s1153_s14 = sphi %s1198_s14, %s1472_s14   ;;  %s1149_s13 = sphi %s1196_s13, %s1471_s13   ;;  %s1145_s12 = sphi %s1194_s12, %s1470_s12  }
   0x8   : > { %p52_p0 = scmp.ne.s32.totalorder %s1149_s13, %s1145_s12  ;;  %p1228_p1 = scmp.eq.s32.totalorder %s772_s18, 0 }
   0x9   : > { %p1232_p2 = scmp.eq.s32.totalorder %s772_s18, 1  ;;  %p136_p3 = scmp.eq.s32.totalorder %s773_s19, 1 }
   0xa   : > { %s1455_s20 = scalar_select %p1228_p1, 1, 0 }
   0xb   : > { %s1456_s21 = scalar_select %p1232_p2, 1, 0 }
   0xc   : > { %p1238_p4 = por %p1228_p1, %p52_p0  ;;  %p774_p5 = scmp.ge.s32.totalorder %s1165_s17, 1 }
   0xd   : > { %p1243_p6 = por %p136_p3, %p52_p0  ;;  %p143_p7 = scmp.lt.s32.totalorder %s1165_s17, 3 }
   0xe   : > { %s1457_s22 = scalar_select %p1238_p4, 1, 0 }
   0xf   : > { %s1458_s23 = scalar_select %p1243_p6, 1, 0 }
  0x10   : > { %p1248_p8 = pnand %p774_p5, %p143_p7  ;;  %s1167_s25 = smov [#allocation5]  }
  0x11   : > { %s158_s26 = sshll.u32 %s1167_s25, 4  ;;  %s32_s28 = sadd.s32 1, %s1161_s16  ;;  %s159_s26 = int_to_ptr.vmem [resolvable:$true] %s158_s26 }
  0x12   : > { %s1459_s24 = scalar_select %p1248_p8, 1, 0 }
  0x13   : > { %p892_p9 = pneg %p1248_p8  ;;  %s1021_s4 = scalar_lea.hbm %s1448_s1, 4096 }
  0x14   : > { %p1022_p12 = scmp.ne.s32.totalorder %s1448_s1, %s1021_s4  ;;  %p1028_p5 = scmp.lt.u32.totalorder %s1021_s4, %s1448_s1 }
  0x15   : > { %p1257_p11 = pnand %p892_p9, %p1228_p1 }
  0x17   : > { %p1023_p13 = pneg %p1257_p11 }
  0x19   : > { %p1024_p0 = pnand %p1023_p13, %p1022_p12 }
  0x1b   : > { %p1025_p3 = pneg %p1024_p0 }
  0x1d   : > { %p1030_p7 = pnand %p1028_p5, %p1025_p3 }
  0x1f   : > { %1033 = shalt.err (!%p1030_p7)
}
  0x20   : > { %s1034_s9 = scalar_lea.vmem %s159_s26, 4096  ;;  %p1042_p1 = scmp.lt.s32.totalorder %s159_s26, %s159_s26 }
  0x21   : > { %p1035_p9 = scmp.ne.s32.totalorder %s159_s26, %s1034_s9  ;;  %p1043_p4 = scmp.lt.s32.totalorder %s1034_s9, %s1034_s9 }
  0x23   : > { %p1037_p10 = pnand %p1035_p9, %p1023_p13  ;;  %p1044_p8 = por %p1043_p4, %p1042_p1 }
  0x25   : > { %p1038_p6 = pneg %p1037_p10 }
  0x27   : > { %p1045_p2 = pnand %p1044_p8, %p1038_p6 }
  0x29   : > { %1048 = shalt.err (!%p1045_p2)
}
  0x2a   : > { %s1168_s10 = smov 128   ;;  %s1169_s11 = smov 8  }
  0x2b   : > { %895 = dma.hbm_to_vmem [thread:$0]  (!%p1257_p11), %s1448_s1, 4096, %s159_s26, [#allocation6], %s1168_s10, %s1168_s10, %s1169_s11  }
  0x2c   : > { %p34_p1 = scmp.ge.s32.totalorder %s32_s28, 2  ;;  %s39_s25 = sadd.s32 1, %s1153_s14 }
  0x2d   : > { %p46_p2 = scmp.ne.s32.totalorder %s1153_s14, %s1149_s13  ;;  %p47_p4 = scmp.eq.s32.totalorder %s1165_s17, 0 }
  0x2e   : > { %s1476_s28 = smov (%p34_p1, %s32_s28), 0  ;;  %p1462_p8 = scmp.ne.s32.totalorder %s1456_s21, 0 }
  0x2f   : > { %p1287_p6 = por %p47_p4, %p46_p2  ;;  %s36_s30 = ssub.s32 %s1161_s16, %s1476_s28 }
  0x30   : > { %p1293_p10 = por %p1462_p8, %p46_p2  ;;  %p905_p12 = scmp.lt.s32.totalorder %s1165_s17, 2 }
  0x31   : > { %p37_p11 = scmp.eq.s32.totalorder %s36_s30, 0  ;;  %s180_s26 = sand.u32 1, %s1153_s14  }
  0x32   : > { %s778_s4 = sshll.u32 %s180_s26, 6  ;;  %s841_s6 = sshll.u32 %s1161_s16, 10 }
  0x33   : > { %s1302_s5 = scalar_select %p37_p11, %s1153_s14, %s39_s25  }
  0x34   : > { %s1308_s9 = scalar_lea.hbm %s1447_s0, %s841_s6  ;;  %s184_s21 = scalar_lea.vmem [#allocation2], %s778_s4 }
  0x35   : > { %s192_s18 = sshll.u32 %s184_s21, 4  ;;  %p1314_p13 = pnand %p905_p12, %p1287_p6  ;;  %s1310_s18 = int_to_ptr.vmem [resolvable:$true] %s192_s18 }
  0x36   : > { %s1318_s25 = scalar_lea.sflag [#allocation3], %s180_s26  ;;  %s1049_s30 = scalar_lea.hbm %s1308_s9, 1024 }
  0x37   : > { %p1050_p0 = scmp.ne.s32.totalorder %s1308_s9, %s1049_s30  ;;  %p1051_p3 = pneg %p1314_p13 }
  0x38   : > { %s1054_s29 = scalar_lea.hbm %s1447_s0, 2048  ;;  %p1055_p9 = scmp.lt.u32.totalorder %s1308_s9, %s1447_s0 }
  0x39   : > { %p1052_p5 = pnand %p1051_p3, %p1050_p0  ;;  %p1056_p1 = scmp.lt.u32.totalorder %s1054_s29, %s1049_s30 }
  0x3a   : > { %p1058_p4 = scmp.lt.u32.totalorder %s1049_s30, %s1308_s9 }
  0x3b   : > { %p1053_p7 = pneg %p1052_p5  ;;  %p1057_p2 = por %p1056_p1, %p1055_p9 }
  0x3d   : > { %p1059_p6 = por %p1058_p4, %p1057_p2 }
  0x3f   : > { %p1060_p8 = pnand %p1059_p6, %p1053_p7 }
  0x41   : > { %1063 = shalt.err (!%p1060_p8)
}
  0x42   : > { %s1064_s26 = scalar_lea.vmem %s1310_s18, 1024  ;;  %s1170_s21 = smov [#allocation2]  }
  0x43   : > { %p1065_p12 = scmp.ne.s32.totalorder %s1310_s18, %s1064_s26  ;;  %s1069_s4 = sshll.u32 %s1170_s21, 4  ;;  %s1070_s4 = int_to_ptr.vmem [resolvable:$false] %s1069_s4 }
  0x44   : > { %s1071_s6 = scalar_lea.vmem %s1070_s4, 2048  ;;  %p1072_p5 = scmp.lt.s32.totalorder %s1310_s18, %s1070_s4 }
  0x45   : > { %p1067_p11 = pnand %p1065_p12, %p1051_p3  ;;  %p1073_p9 = scmp.lt.s32.totalorder %s1071_s6, %s1064_s26 }
  0x47   : > { %p1068_p0 = pneg %p1067_p11  ;;  %p1074_p1 = por %p1073_p9, %p1072_p5 }
  0x49   : > { %p1075_p2 = pnand %p1074_p1, %p1068_p0 }
  0x4b   : > { %1078 = shalt.err (!%p1075_p2)
}
  0x4c   : > { %899 = dma.hbm_to_vmem [thread:$0]  (!%p1314_p13), %s1308_s9, 1024, %s1310_s18, %s1318_s25, %s1168_s10, %s1168_s10, %s1169_s11  }
  0x4d   : > { %p1465_p3 = scmp.ne.s32.totalorder %s1459_s24, 0 }
  0x4e   : > { %s1352_s30 = sand.u32 (!%p1465_p3), 1, %s1149_s13   ;;  %p1466_p7 = scmp.ne.s32.totalorder (!%p1465_p3), %s1457_s22, 0 }
  0x4f   : > { %204 = sbr.rel (%p1465_p3) target bundleno = 399 (0x18f), region = 32  ;;  %s783_s29 = sshll.u32 (!%p1465_p3), %s1352_s30, 6 }
  0x50   : > { %s207_s7 = scalar_lea.sflag (!%p1465_p3), [#allocation3], %s1352_s30  ;;  %s1358_s19 = scalar_lea.vmem (!%p1465_p3), [#allocation2], %s783_s29 }
  0x56   : > { %1132 = dma.done.wait (%p1466_p7), %s207_s7, 1024  }
  0x57   : > { %1134 = vsyncadd (%p1466_p7), %s207_s7, 4294966272  ;;  %p1467_p13 = scmp.ne.s32.totalorder %s1455_s20, 0 }
  0x59   : > { %1136 = dma.done.wait (%p1467_p13), [#allocation6], 4096  }
  0x5a   : > { %1138 = vsyncadd (%p1467_p13), [#allocation6], 4294963200  ;;  %v961_v0 = vld [vmem:[#allocation5 + $0x4] ss:$8 sps:$4 sm:$0xff]   ;;  %v963_v1 = vld [vmem:[#allocation5] ss:$8 sps:$4 sm:$0xff]   ;;  %v292_v40 = vlaneseq }
  0x5b   : > { %502 = vmatprep.subr.bf16.mxu0 %v961_v0  ;;  %852 = vmatprep.subr.bf16.mxu1 %v961_v0  ;;  %v964_v2 = vld [vmem:[#allocation5 + $0x14] ss:$8 sps:$4 sm:$0xff]   ;;  %v966_v3 = vld [vmem:[#allocation5 + $0x10] ss:$8 sps:$4 sm:$0xff]   ;;  %v967_v4 = vld [vmem:[#allocation5 + $0x24] ss:$8 sps:$4 sm:$0xff]  }
  0x5c   : > { %503 = vmatpush1.bf16.msra.mxu0 %v963_v1  ;;  %868 = vmatpush1.bf16.msra.mxu1 %v963_v1  ;;  %v969_v5 = vld [vmem:[#allocation5 + $0x20] ss:$8 sps:$4 sm:$0xff]   ;;  %v970_v6 = vld [vmem:[#allocation5 + $0x34] ss:$8 sps:$4 sm:$0xff]   ;;  %v972_v7 = vld [vmem:[#allocation5 + $0x30] ss:$8 sps:$4 sm:$0xff]  }
  0x5d   : > { %504 = vmatprep.subr.bf16.mxu0 %v964_v2  ;;  %853 = vmatprep.subr.bf16.mxu1 %v964_v2  ;;  %v973_v8 = vld [vmem:[#allocation5 + $0x44] ss:$8 sps:$4 sm:$0xff]   ;;  %v975_v9 = vld [vmem:[#allocation5 + $0x40] ss:$8 sps:$4 sm:$0xff]   ;;  %v976_v10 = vld [vmem:[#allocation5 + $0x54] ss:$8 sps:$4 sm:$0xff]  }
  0x5e   : > { %v978_v11 = vld [vmem:[#allocation5 + $0x50] ss:$8 sps:$4 sm:$0xff]   ;;  %v979_v12 = vld [vmem:[#allocation5 + $0x64] ss:$8 sps:$4 sm:$0xff]   ;;  %v981_v14 = vld [vmem:[#allocation5 + $0x60] ss:$8 sps:$4 sm:$0xff]  }
  0x5f   : > { %v1011_v13 = vld [vmem:[%s1358_s19 + $0x4] ss:$8 sps:$4 sm:$0xff]   ;;  %v982_v16 = vld [vmem:[#allocation5 + $0x74] ss:$8 sps:$4 sm:$0xff]   ;;  %v984_v17 = vld [vmem:[#allocation5 + $0x70] ss:$8 sps:$4 sm:$0xff]  }
  0x60   : > { %505 = vmatpush1.bf16.msra.mxu0 %v966_v3  ;;  %869 = vmatpush1.bf16.msra.mxu1 %v966_v3  ;;  %v1014_v15 = vld [vmem:[%s1358_s19 + $0x24] ss:$8 sps:$4 sm:$0xff]   ;;  %v987_v19 = vld [vmem:[#allocation5 + $0x80] ss:$8 sps:$4 sm:$0xff]   ;;  %v988_v20 = vld [vmem:[#allocation5 + $0x94] ss:$8 sps:$4 sm:$0xff]  }
  0x61   : > { %506 = vmatprep.subr.bf16.mxu0 %v967_v4  ;;  %854 = vmatprep.subr.bf16.mxu1 %v967_v4  ;;  %v985_v18 = vld [vmem:[#allocation5 + $0x84] ss:$8 sps:$4 sm:$0xff]   ;;  %v990_v21 = vld [vmem:[#allocation5 + $0x90] ss:$8 sps:$4 sm:$0xff]   ;;  %v993_v23 = vld [vmem:[#allocation5 + $0xa0] ss:$8 sps:$4 sm:$0xff]  }
  0x62   : > { %534 = vmatprep.mubr.bf16.mxu0 %v1011_v13  ;;  %554 = vmatprep.mubr.bf16.mxu1 %v1014_v15  ;;  %v991_v22 = vld [vmem:[#allocation5 + $0xa4] ss:$8 sps:$4 sm:$0xff]   ;;  %v994_v24 = vld [vmem:[#allocation5 + $0xb4] ss:$8 sps:$4 sm:$0xff]   ;;  %v996_v25 = vld [vmem:[#allocation5 + $0xb0] ss:$8 sps:$4 sm:$0xff]  }
  0x63   : > { %v997_v26 = vld [vmem:[#allocation5 + $0xc4] ss:$8 sps:$4 sm:$0xff]   ;;  %v999_v27 = vld [vmem:[#allocation5 + $0xc0] ss:$8 sps:$4 sm:$0xff]   ;;  %v1000_v28 = vld [vmem:[#allocation5 + $0xd4] ss:$8 sps:$4 sm:$0xff]  }
  0x64   : > { %507 = vmatpush1.bf16.msra.mxu0 %v969_v5  ;;  %870 = vmatpush1.bf16.msra.mxu1 %v969_v5  ;;  %v1002_v29 = vld [vmem:[#allocation5 + $0xd0] ss:$8 sps:$4 sm:$0xff]   ;;  %v1003_v30 = vld [vmem:[#allocation5 + $0xe4] ss:$8 sps:$4 sm:$0xff]   ;;  %v1005_v31 = vld [vmem:[#allocation5 + $0xe0] ss:$8 sps:$4 sm:$0xff]  }
  0x65   : > { %508 = vmatprep.subr.bf16.mxu0 %v970_v6  ;;  %855 = vmatprep.subr.bf16.mxu1 %v970_v6  ;;  %v1006_v32 = vld [vmem:[#allocation5 + $0xf4] ss:$8 sps:$4 sm:$0xff]   ;;  %v1008_v33 = vld [vmem:[#allocation5 + $0xf0] ss:$8 sps:$4 sm:$0xff]   ;;  %v1009_v34 = vld [vmem:[%s1358_s19] ss:$8 sps:$4 sm:$0xff]  }
  0x66   : > { %v1012_v35 = vld [vmem:[%s1358_s19 + $0x20] ss:$8 sps:$4 sm:$0xff]   ;;  %v1015_v36 = vld [vmem:[%s1358_s19 + $0x14] ss:$8 sps:$4 sm:$0xff]   ;;  %v1019_v38 = vld [vmem:[%s1358_s19 + $0x10] ss:$8 sps:$4 sm:$0xff]  }
  0x67   : > { %v1017_v37 = vld [vmem:[%s1358_s19 + $0x34] ss:$8 sps:$4 sm:$0xff]   ;;  %v1020_v39 = vld [vmem:[%s1358_s19 + $0x30] ss:$8 sps:$4 sm:$0xff]   ;;  %v293_v41 = vshrl.u32 %v292_v40, 7  ;;  %s1381_s24 = scalar_lea.vmem [#allocation7], %s783_s29 }
  0x68   : > { %509 = vmatpush1.bf16.msra.mxu0 %v972_v7  ;;  %871 = vmatpush1.bf16.msra.mxu1 %v972_v7  ;;  %v290_v43 = vld [vmem:[%s1449_s2] sm:$0x3]  ;;  %s664_s10 = sshll.u32 %s1381_s24, 4  ;;  %s851_s11 = sshll.u32 %s1157_s15, 10  ;;  %s1389_s10 = int_to_ptr.vmem [resolvable:$true] %s664_s10 }
  0x69   : > { %510 = vmatprep.subr.bf16.mxu0 %v973_v8  ;;  %856 = vmatprep.subr.bf16.mxu1 %v973_v8  ;;  %v294_v42 = vsub.s32 0, %v293_v41  ;;  %v298_v44 = vsub.s32 1, %v293_v41  ;;  %s1394_s25 = scalar_lea.hbm %s1450_s3, %s851_s11  ;;  %s648_s15 = scalar_lea.sflag [#allocation4], %s1352_s30 }
  0x6a   : > { %s1079_s8 = scalar_lea.vmem %s1389_s10, 1024  ;;  %s1171_s26 = smov [#allocation7]  }
  0x6b   : > { %v295_v45 = vrot.slane %v290_v43, %v294_v42  ;;  %v299_v46 = vrot.slane %v290_v43, %v298_v44  ;;  %p1080_p4 = scmp.ne.s32.totalorder %s1389_s10, %s1079_s8  ;;  %s1083_s21 = sshll.u32 %s1171_s26, 4  ;;  %s1084_s21 = int_to_ptr.vmem [resolvable:$false] %s1083_s21 }
  0x6c   : > { %511 = vmatpush1.bf16.msra.mxu0 %v975_v9  ;;  %872 = vmatpush1.bf16.msra.mxu1 %v975_v9  ;;  %s1085_s4 = scalar_lea.vmem %s1084_s21, 2048  ;;  %p1086_p12 = scmp.lt.s32.totalorder %s1389_s10, %s1084_s21 }
  0x6d   : > { %512 = vmatprep.subr.bf16.mxu0 %v976_v10  ;;  %857 = vmatprep.subr.bf16.mxu1 %v976_v10  ;;  %p1081_p6 = pnand %p1080_p4, %p1293_p10  ;;  %p1087_p11 = scmp.lt.s32.totalorder %s1085_s4, %s1079_s8 }
  0x6f   : > { %p1082_p8 = pneg %p1081_p6  ;;  %p1088_p0 = por %p1087_p11, %p1086_p12 }
  0x70   : > { %513 = vmatpush1.bf16.msra.mxu0 %v978_v11  ;;  %873 = vmatpush1.bf16.msra.mxu1 %v978_v11 }
  0x71   : > { %514 = vmatprep.subr.bf16.mxu0 %v979_v12  ;;  %858 = vmatprep.subr.bf16.mxu1 %v979_v12  ;;  %p1089_p5 = pnand %p1088_p0, %p1082_p8 }
  0x74   : > { %515 = vmatpush1.bf16.msra.mxu0 %v981_v14  ;;  %874 = vmatpush1.bf16.msra.mxu1 %v981_v14 }
  0x75   : > { %516 = vmatprep.subr.bf16.mxu0 %v982_v16  ;;  %859 = vmatprep.subr.bf16.mxu1 %v982_v16 }
  0x78   : > { %517 = vmatpush1.bf16.msra.mxu0 %v984_v17  ;;  %875 = vmatpush1.bf16.msra.mxu1 %v984_v17 }
  0x79   : > { %518 = vmatprep.subr.bf16.mxu0 %v985_v18  ;;  %860 = vmatprep.subr.bf16.mxu1 %v985_v18 }
  0x7c   : > { %519 = vmatpush1.bf16.msra.mxu0 %v987_v19  ;;  %876 = vmatpush1.bf16.msra.mxu1 %v987_v19 }
  0x7d   : > { %520 = vmatprep.subr.bf16.mxu0 %v988_v20  ;;  %861 = vmatprep.subr.bf16.mxu1 %v988_v20 }
  0x80   : > { %521 = vmatpush1.bf16.msra.mxu0 %v990_v21  ;;  %877 = vmatpush1.bf16.msra.mxu1 %v990_v21 }
  0x81   : > { %522 = vmatprep.subr.bf16.mxu0 %v991_v22  ;;  %862 = vmatprep.subr.bf16.mxu1 %v991_v22 }
  0x84   : > { %523 = vmatpush1.bf16.msra.mxu0 %v993_v23  ;;  %878 = vmatpush1.bf16.msra.mxu1 %v993_v23 }
  0x85   : > { %524 = vmatprep.subr.bf16.mxu0 %v994_v24  ;;  %863 = vmatprep.subr.bf16.mxu1 %v994_v24 }
  0x88   : > { %525 = vmatpush1.bf16.msra.mxu0 %v996_v25  ;;  %879 = vmatpush1.bf16.msra.mxu1 %v996_v25 }
  0x89   : > { %526 = vmatprep.subr.bf16.mxu0 %v997_v26  ;;  %864 = vmatprep.subr.bf16.mxu1 %v997_v26 }
  0x8c   : > { %527 = vmatpush1.bf16.msra.mxu0 %v999_v27  ;;  %880 = vmatpush1.bf16.msra.mxu1 %v999_v27 }
  0x8d   : > { %528 = vmatprep.subr.bf16.mxu0 %v1000_v28  ;;  %865 = vmatprep.subr.bf16.mxu1 %v1000_v28 }
  0x90   : > { %529 = vmatpush1.bf16.msra.mxu0 %v1002_v29  ;;  %881 = vmatpush1.bf16.msra.mxu1 %v1002_v29 }
  0x91   : > { %530 = vmatprep.subr.bf16.mxu0 %v1003_v30  ;;  %866 = vmatprep.subr.bf16.mxu1 %v1003_v30 }
  0x94   : > { %531 = vmatpush1.bf16.msra.mxu0 %v1005_v31  ;;  %882 = vmatpush1.bf16.msra.mxu1 %v1005_v31 }
  0x95   : > { %532 = vmatprep.subr.bf16.mxu0 %v1006_v32  ;;  %867 = vmatprep.subr.bf16.mxu1 %v1006_v32 }
  0x98   : > { %533 = vmatpush1.bf16.msra.mxu0 %v1008_v33  ;;  %883 = vmatpush1.bf16.msra.mxu1 %v1008_v33 }
  0x9b   : > { %535 = vmatmul.mubr.bf16.vlgmr.msra.gmra.mrb[0].mxu0 %v1009_v34  ;;  %555 = vmatmul.mubr.bf16.vlgmr.msra.gmra.mrb[0].mxu1 %v1012_v35 }
  0x9c   : > { %544 = vmatprep.mubr.bf16.mxu0 %v1015_v36  ;;  %564 = vmatprep.mubr.bf16.mxu1 %v1017_v37 }
  0xa3   : > { %545 = vmatmul.mubr.bf16.gmra.mrb[4].mxu0 %v1019_v38  ;;  %565 = vmatmul.mubr.bf16.gmra.mrb[4].mxu1 %v1020_v39 }
 0x16e   : > { %v536_v47 = vpop.f32.mrb[0].mxu0  ;;  %v556_v48 = vpop.f32.mrb[0].mxu1 }
 0x16f   : > { %v537_v49 = vadd.f32 %v536_v47, %v295_v45  ;;  %v557_v50 = vadd.f32 %v556_v48, %v295_v45  ;;  %v538_v51 = vpop.f32.mrb[1].mxu0  ;;  %v558_v52 = vpop.f32.mrb[1].mxu1 }
 0x170   : > { %v539_v53 = vadd.f32 %v538_v51, %v299_v46  ;;  %v559_v54 = vadd.f32 %v558_v52, %v299_v46  ;;  %v540_v55 = vpop.f32.mrb[2].mxu0  ;;  %v560_v56 = vpop.f32.mrb[2].mxu1 }
 0x171   : > { %v575_v57 = vmax.f32 %v537_v49, 0.0  ;;  %v583_v58 = vmax.f32 %v557_v50, 0.0  ;;  %v541_v59 = vadd.f32 %v540_v55, %v295_v45  ;;  %v561_v60 = vadd.f32 %v560_v56, %v295_v45  ;;  %v542_v61 = vpop.f32.mrb[3].mxu0  ;;  %v562_v62 = vpop.f32.mrb[3].mxu1 }
 0x172   : > { %v576_v63 = vmax.f32 %v539_v53, 0.0  ;;  %v584_v0 = vmax.f32 %v559_v54, 0.0  ;;  %v543_v1 = vadd.f32 %v542_v61, %v299_v46  ;;  %v563_v2 = vadd.f32 %v562_v62, %v299_v46 }
 0x173   : > { %v577_v3 = vmax.f32 %v541_v59, 0.0  ;;  %v585_v4 = vmax.f32 %v561_v60, 0.0 }
 0x174   : > { %v842_v5 = vpack.c.bf16 %v576_v63, %v575_v57  ;;  %v846_v6 = vpack.c.bf16 %v584_v0, %v583_v58  ;;  %v578_v7 = vmax.f32 %v543_v1, 0.0  ;;  %v586_v8 = vmax.f32 %v563_v2, 0.0 }
 0x176   : > { %639 = vst [vmem:[%s1381_s24] sm:$0xff] %v842_v5  ;;  %643 = vst [vmem:[%s1381_s24 + $0x20] sm:$0xff] %v846_v6  ;;  %v843_v9 = vpack.c.bf16 %v578_v7, %v577_v3  ;;  %v847_v10 = vpack.c.bf16 %v586_v8, %v585_v4  ;;  %v546_v11 = vpop.f32.mrb[4].mxu0  ;;  %v566_v12 = vpop.f32.mrb[4].mxu1 }
 0x177   : > { %v547_v13 = vadd.f32 %v546_v11, %v295_v45  ;;  %v567_v14 = vadd.f32 %v566_v12, %v295_v45  ;;  %v548_v15 = vpop.f32.mrb[5].mxu0  ;;  %v568_v16 = vpop.f32.mrb[5].mxu1 }
 0x178   : > { %640 = vst [vmem:[%s1381_s24 + $0x8] sm:$0xff] %v843_v9  ;;  %644 = vst [vmem:[%s1381_s24 + $0x28] sm:$0xff] %v847_v10  ;;  %v549_v17 = vadd.f32 %v548_v15, %v299_v46  ;;  %v569_v18 = vadd.f32 %v568_v16, %v299_v46  ;;  %v550_v19 = vpop.f32.mrb[6].mxu0  ;;  %v570_v20 = vpop.f32.mrb[6].mxu1 }
 0x179   : > { %v579_v21 = vmax.f32 %v547_v13, 0.0  ;;  %v587_v22 = vmax.f32 %v567_v14, 0.0  ;;  %v551_v23 = vadd.f32 %v550_v19, %v295_v45  ;;  %v571_v24 = vadd.f32 %v570_v20, %v295_v45  ;;  %v552_v25 = vpop.f32.mrb[7].mxu0  ;;  %v572_v26 = vpop.f32.mrb[7].mxu1 }
 0x17a   : > { %v580_v27 = vmax.f32 %v549_v17, 0.0  ;;  %v588_v28 = vmax.f32 %v569_v18, 0.0  ;;  %v553_v29 = vadd.f32 %v552_v25, %v299_v46  ;;  %v573_v30 = vadd.f32 %v572_v26, %v299_v46 }
 0x17b   : > { %v581_v31 = vmax.f32 %v551_v23, 0.0  ;;  %v589_v32 = vmax.f32 %v571_v24, 0.0 }
 0x17c   : > { %v844_v33 = vpack.c.bf16 %v580_v27, %v579_v21  ;;  %v848_v34 = vpack.c.bf16 %v588_v28, %v587_v22  ;;  %v582_v35 = vmax.f32 %v553_v29, 0.0  ;;  %v590_v36 = vmax.f32 %v573_v30, 0.0 }
 0x17e   : > { %641 = vst [vmem:[%s1381_s24 + $0x10] sm:$0xff] %v844_v33  ;;  %645 = vst [vmem:[%s1381_s24 + $0x30] sm:$0xff] %v848_v34  ;;  %v845_v37 = vpack.c.bf16 %v582_v35, %v581_v31  ;;  %v849_v38 = vpack.c.bf16 %v590_v36, %v589_v32 }
 0x180   : > { %642 = vst [vmem:[%s1381_s24 + $0x18] sm:$0xff] %v845_v37  ;;  %646 = vst [vmem:[%s1381_s24 + $0x38] sm:$0xff] %v849_v38 }
 0x181   : > { %1092 = shalt.err (!%p1089_p5)
}
 0x182   : > { %s1093_s6 = scalar_lea.hbm %s1394_s25, 1024  ;;  %s1097_s19 = scalar_lea.hbm %s1450_s3, 2048 }
 0x183   : > { %p1094_p9 = scmp.ne.s32.totalorder %s1394_s25, %s1093_s6  ;;  %p1098_p3 = scmp.lt.u32.totalorder %s1394_s25, %s1450_s3 }
 0x184   : > { %p1099_p7 = scmp.lt.u32.totalorder %s1097_s19, %s1093_s6  ;;  %p1101_p4 = scmp.lt.u32.totalorder %s1093_s6, %s1394_s25 }
 0x185   : > { %p1095_p1 = pnand %p1094_p9, %p1293_p10 }
 0x186   : > { %p1100_p13 = por %p1099_p7, %p1098_p3 }
 0x187   : > { %p1096_p2 = pneg %p1095_p1 }
 0x188   : > { %p1102_p6 = por %p1101_p4, %p1100_p13 }
 0x18a   : > { %p1103_p8 = pnand %p1102_p6, %p1096_p2 }
 0x18c   : > { %1106 = shalt.err (!%p1103_p8)
}
 0x18d   : > { %s1172_s24 = smov 128   ;;  %s1173_s11 = smov 8  }
 0x18e   : > { %890 = dma.vmem_to_hbm [thread:$0]  (%p1293_p10), %s1389_s10, 1024, %s1394_s25, %s648_s15, %s1172_s24, %s1172_s24, %s1173_s11  }
 0x18f PF: > { %s679_s9 = sand.u32 1, %s1145_s12   ;;  %p1468_p12 = scmp.ne.s32.totalorder %s1458_s23, 0 }
 0x190   : > { %p1469_p11 = scmp.ge.s32.totalorder %s1165_s17, 2  ;;  %s680_s18 = scalar_lea.sflag [#allocation4], %s679_s9 }
 0x192   : > { %p901_p0 = pnand %p1469_p11, %p1468_p12 }
 0x194   : > { %1140 = dma.done.wait (!%p901_p0), %s680_s18, 1024  }
 0x195   : > { %1142 = vsyncadd (!%p901_p0), %s680_s18, 4294966272  ;;  %s20_s17 = sadd.s32 1, %s1165_s17   ;;  %s1470_s12 = smov %s1149_s13 }
 0x196   : > { %p17_p5 = scmp.ge.s32.totalorder %s20_s17, 4   ;;  %s1471_s13 = smov %s1153_s14 }
 0x197   : > { %s1472_s14 = smov %s1302_s5  ;;  %s1473_s15 = smov %s1161_s16 }
 0x198   : > { %s1474_s16 = smov %s1476_s28  ;;  %19 = sbr.rel (!%p17_p5) target bundleno = 7 (0x7), region = 85 }
 0x19f   :  { %685 = vsyncpa [#allocation3], 1 }
 0x1a0   :  { %687 = vsyncpa [#allocation3 + $0x1], 1 }
 0x1a1   :  { %688 = vsyncpa [#allocation6], 1 }
 0x1a2   :  { %689 = vsyncpa [#allocation4], 1 }
 0x1a3   :  { %691 = vsyncpa [#allocation4 + $0x1], 1 }

</bundles_post_ra>
